<compile_context>
chip_gen: v6e
topology: v6e:2x2x1
jax: 0.10.0
libtpu: 0.0.40
codegen_flags: <defaults>
</compile_context>

<pallas_src>
import functools
import math

import jax
import jax.numpy as jnp
import numpy as np
from jax.experimental import pallas as pl
from jax.experimental.pallas import tpu as pltpu


_LANES = 128  # slab lane width (full vreg lanes)


def _round_up(n, m):
    return ((n + m - 1) // m) * m


def _slab_layout(C, RD):
    """Row offsets of each section inside the packed weight slab."""
    R1 = 3 * RD                    # wo / bo rows
    R2 = R1 + C                    # wa / ba rows
    R3 = _round_up(R2 + 4, 8)      # S rows (sublane-tile aligned)
    rows = _round_up(R3 + RD, 8)
    return R1, R2, R3, rows


# ----------------------------------------------------------------------------
# Host-side, one-time packing of every weight/bias + S into a single f32 slab.
#
# Slab layout (rows x 128 lanes), f32:
#   rows [0 : 3RD)        cols [0 : 3C)   block-diag [wq*1/sqrt(rd); wk; wv]
#                         col  [3C]       [bq*1/sqrt(rd); bk; bv]
#   rows [3RD : 3RD+C)    cols [0 : RD)   wo              col [RD]   bo
#   rows [R2 : R2+4)      cols [0 : 4C)   wa              col [4C]   ba
#   rows [R3 : R3+RD)     cols [0 : RD)   S (per-head block-diag ones)
# ----------------------------------------------------------------------------
def pack_params(params, *, heads):
    wq, bq = params["wq"], params["bq"]
    wk, bk = params["wk"], params["bk"]
    wv, bv = params["wv"], params["bv"]
    wo, bo = params["wo"], params["bo"]
    wa, ba = params["wa"], params["ba"]

    RD, C = wq.shape
    assert RD % heads == 0
    rd = RD // heads
    inv_sqrt = 1.0 / math.sqrt(float(rd))

    R1, R2, R3, rows = _slab_layout(C, RD)
    assert max(3 * C + 1, RD + 1, 4 * C + 1, RD) <= _LANES

    slab = jnp.zeros((rows, _LANES), jnp.float32)
    # Block-diagonal fused qkv weight; 1/sqrt(rd) folded into the q rows.
    slab = slab.at[0:RD, 0:C].set(wq * inv_sqrt)
    slab = slab.at[RD:2 * RD, C:2 * C].set(wk)
    slab = slab.at[2 * RD:3 * RD, 2 * C:3 * C].set(wv)
    slab = slab.at[0:RD, 3 * C:3 * C + 1].set(bq * inv_sqrt)
    slab = slab.at[RD:2 * RD, 3 * C:3 * C + 1].set(bk)
    slab = slab.at[2 * RD:3 * RD, 3 * C:3 * C + 1].set(bv)
    # Output conv.
    slab = slab.at[R1:R1 + C, 0:RD].set(wo)
    slab = slab.at[R1:R1 + C, RD:RD + 1].set(bo)
    # Gating conv (column order == PyTorch concat order [x1, x2, x3, attended]).
    slab = slab.at[R2:R2 + 4, 0:4 * C].set(wa)
    slab = slab.at[R2:R2 + 4, 4 * C:4 * C + 1].set(ba)
    # Per-head block-diagonal ones: softmax mask AND per-head channel-sum operator.
    S = jnp.kron(jnp.eye(heads, dtype=jnp.float32), jnp.ones((rd, rd), jnp.float32))
    slab = slab.at[R3:R3 + RD, 0:RD].set(S)
    return slab


# ----------------------------------------------------------------------------
# Fused kernel: one grid step processes `bt_block` batch items; every tensor is a
# lane-dense (C, HW) tile.  One packed weight slab feeds all matmuls.
# ----------------------------------------------------------------------------
def _make_csa_kernel(C, RD, heads, bt_block, compute_softmax):
    R1, R2, R3, _ = _slab_layout(C, RD)

    def kernel(x1_ref, x2_ref, x3_ref, x4_ref, w_ref, o_ref):
        # ---- static slices of the single packed weight slab (hoisted) ----
        wo = w_ref[R1:R1 + C, 0:RD]
        bo = w_ref[R1:R1 + C, RD:RD + 1]
        wa = w_ref[R2:R2 + 4, 0:4 * C]
        ba = w_ref[R2:R2 + 4, 4 * C:4 * C + 1]
        S = w_ref[R3:R3 + RD, 0:RD]                       # (RD, RD) block-diag ones
        if compute_softmax:
            wqkv = w_ref[0:3 * RD, 0:3 * C]               # block-diag [wq*s; wk; wv]
            bqkv = w_ref[0:3 * RD, 3 * C:3 * C + 1]
            mask_bias = (S - 1.0) * 1e30                  # 0 in-head, -1e30 off-head
        else:
            wv = w_ref[2 * RD:3 * RD, 2 * C:3 * C]
            bv = w_ref[2 * RD:3 * RD, 3 * C:3 * C + 1]

        for bt in range(bt_block):                        # static unroll (Bt small)
            x1 = x1_ref[bt]                               # (C, HW), HW lane-dense
            x2 = x2_ref[bt]
            x3 = x3_ref[bt]
            x4 = x4_ref[bt]

            # Channel-stacked inputs: reused by the fused qkv projection and the
            # gating conv (PyTorch concat order [x1, x2, x3, attended]).
            xcat123 = jnp.concatenate([x1, x2, x3], axis=0)          # (3C, HW)

            if compute_softmax:
                # One fused MXU push for q/k/v (K = 3C), biases added per row.
                qkv = (jnp.dot(wqkv, xcat123, preferred_element_type=jnp.float32)
                       + bqkv)                                        # (3RD, HW)
                q = qkv[0:RD]                     # already scaled by 1/sqrt(rd)
                k = qkv[RD:2 * RD]
                v = qkv[2 * RD:3 * RD]
                # Per-head channel-attention logits (contract over HW on the MXU).
                g = jax.lax.dot_general(q, k, (((1,), (1,)), ((), ())),
                                        preferred_element_type=jnp.float32)
                g = g + mask_bias                 # restrict softmax to head blocks
                rowmax = jnp.max(g, axis=-1, keepdims=True)
                e = jnp.exp(g - rowmax)
                denom = jnp.sum(e, axis=-1, keepdims=True)
                # sum_k attn[q, k] == denom / denom; divide on the (otherwise idle) EUP.
                rowsum = denom * pl.reciprocal(denom, approx=True)    # (RD, 1) ~= 1
            else:
                # Fast path: the softmax branch is mathematically inert
                # (rowsum == 1), so only the V projection is needed.
                v = jnp.dot(wv, x3, preferred_element_type=jnp.float32) + bv  # (RD, HW)

            # einsum('bhqk,bhvd->bhqd') factorization: per-head channel sums of V,
            # (optionally) scaled by the attention row sums.
            vsum = jnp.dot(S, v, preferred_element_type=jnp.float32)  # (RD, HW)
            vprime = vsum * rowsum if compute_softmax else vsum

            attended = (jnp.dot(wo, vprime, preferred_element_type=jnp.float32)
                        + bo + x4)                                     # (C, HW)

            # Gating conv: single K=4C matmul on the channel-stacked inputs.
            xcat = jnp.concatenate([xcat123, attended], axis=0)       # (4C, HW)
            gate = jax.nn.sigmoid(
                jnp.dot(wa, xcat, preferred_element_type=jnp.float32) + ba)  # (4, HW)

            out = (gate[0:1] * x1 + gate[1:2] * x2
                   + gate[2:3] * x3 + gate[3:4] * attended)            # (C, HW)
            o_ref[bt] = out.astype(o_ref.dtype)

    return kernel


def cross_sigmoid_attention(packed_w, x1, x2, x3, x4, *, reduced_dim, heads,
                            compute_softmax=False, batch_block=None):
    """Inputs NCHW (B, C, H, W); `packed_w` from pack_params(). Returns NCHW."""
    B, C, H, W = x1.shape
    RD = reduced_dim
    HW = H * W

    if batch_block is None:
        # Keep >=2 grid steps so both v7x TensorCores get work on the "parallel"
        # batch axis (B=2 -> Bt=1, grid=(2,)); cap Bt to bound per-step VMEM.
        target = min(max(1, B // 2), 16)
        batch_block = next(bb for bb in range(target, 0, -1) if B % bb == 0)
    Bt = batch_block
    assert B % Bt == 0

    # Free row-major reshape: (B, C, H, W) -> lane-dense (B, C, HW) tiles.
    xs = [x.reshape(B, C, HW) for x in (x1, x2, x3, x4)]

    kernel = _make_csa_kernel(C, RD, heads, Bt, compute_softmax)

    x_spec = pl.BlockSpec((Bt, C, HW), lambda b: (b, 0, 0))
    w_spec = pl.BlockSpec(packed_w.shape, lambda b: (0, 0))   # resident constant slab

    out = pl.pallas_call(
        kernel,
        out_shape=jax.ShapeDtypeStruct((B, C, HW), x1.dtype),
        grid_spec=pltpu.PrefetchScalarGridSpec(
            num_scalar_prefetch=0,
            grid=(B // Bt,),
            in_specs=[x_spec, x_spec, x_spec, x_spec, w_spec],
            out_specs=pl.BlockSpec((Bt, C, HW), lambda b: (b, 0, 0)),
        ),
        compiler_params=pltpu.CompilerParams(
            dimension_semantics=("parallel",)),   # v7x: one step per TensorCore
    )(*xs, packed_w)

    return out.reshape(B, C, H, W)


# ----------------------------------------------------------------------------
# Deterministic parameter init (1x1 conv weights stored as (Cout, Cin)).
# ----------------------------------------------------------------------------
def init_params(key, channels, reduced_dim, scale=0.1):
    ks = jax.random.split(key, 10)
    C, RD = channels, reduced_dim

    def w(k, cout, cin):
        return jax.random.normal(k, (cout, cin), jnp.float32) * scale

    def b(k, cout):
        return jax.random.normal(k, (cout, 1), jnp.float32) * scale

    return {
        "wq": w(ks[0], RD, C), "bq": b(ks[1], RD),
        "wk": w(ks[2], RD, C), "bk": b(ks[3], RD),
        "wv": w(ks[4], RD, C), "bv": b(ks[5], RD),
        "wo": w(ks[6], C, RD), "bo": b(ks[7], C),
        "wa": w(ks[8], 4, 4 * C), "ba": b(ks[9], 4),
    }


# ----------------------------------------------------------------------------
# Pure-JAX reference mirroring the PyTorch forward, for a correctness check.
# ----------------------------------------------------------------------------
def reference_forward(params, x1, x2, x3, x4, heads):
    B, C, H, W = x1.shape
    RD = params["wq"].shape[0]
    rd = RD // heads
    HW = H * W

    def conv1x1(x, w, b):
        return jnp.einsum("oc,bchw->bohw", w, x) + b.reshape(1, -1, 1, 1)

    q = conv1x1(x1, params["wq"], params["bq"]).reshape(B, heads, rd, HW)
    k = conv1x1(x2, params["wk"], params["bk"]).reshape(B, heads, rd, HW)
    v = conv1x1(x3, params["wv"], params["bv"]).reshape(B, heads, rd, HW)
    qk = jnp.einsum("bhqd,bhkd->bhqk", q, k) / math.sqrt(rd)
    attn = jax.nn.softmax(qk, axis=-1)
    vo = jnp.einsum("bhqk,bhvd->bhqd", attn, v).reshape(B, RD, H, W)
    attended = conv1x1(vo, params["wo"], params["bo"]) + x4
    concat = jnp.concatenate([x1, x2, x3, attended], axis=1)
    gate = jax.nn.sigmoid(conv1x1(concat, params["wa"], params["ba"]))
    return (gate[:, 0:1] * x1 + gate[:, 1:2] * x2
            + gate[:, 2:3] * x3 + gate[:, 3:4] * attended)


# ----------------------------------------------------------------------------
if __name__ == "__main__":
    B, C, H, W = 2, 8, 16, 16
    reduced_dim, heads = 16, 4

    key = jax.random.PRNGKey(0)
    kp, k1, k2, k3, k4 = jax.random.split(key, 5)
    params = init_params(kp, C, reduced_dim)

    x1 = jax.random.normal(k1, (B, C, H, W), jnp.float32)
    x2 = jax.random.normal(k2, (B, C, H, W), jnp.float32)
    x3 = jax.random.normal(k3, (B, C, H, W), jnp.float32)
    x4 = jax.random.normal(k4, (B, C, H, W), jnp.float32)

    # One-time host-side weight packing (outside the jitted forward).
    packed = pack_params(params, heads=heads)
    ref = reference_forward(params, x1, x2, x3, x4, heads)

    # Default fast path: the inert softmax branch is elided (identical math).
    fwd = jax.jit(functools.partial(
        cross_sigmoid_attention, reduced_dim=reduced_dim, heads=heads,
        compute_softmax=False))
    out = fwd(packed, x1, x2, x3, x4)
    jax.block_until_ready(out)

    assert out.shape == (B, C, H, W), out.shape
    assert out.dtype == jnp.float32
    err_fast = float(jnp.max(jnp.abs(out - ref)))
    assert np.isfinite(err_fast) and err_fast < 1e-3, f"fast-path max abs err {err_fast}"

    # Optional path that materializes the (mathematically inert) softmax on-chip;
    # slightly looser tolerance because the divide uses the EUP approx reciprocal.
    fwd_sm = jax.jit(functools.partial(
        cross_sigmoid_attention, reduced_dim=reduced_dim, heads=heads,
        compute_softmax=True))
    out_sm = fwd_sm(packed, x1, x2, x3, x4)
    jax.block_until_ready(out_sm)
    err_sm = float(jnp.max(jnp.abs(out_sm - ref)))
    assert np.isfinite(err_sm) and err_sm < 2e-3, f"softmax-path max abs err {err_sm}"

    print("KERNEL_OK")
</pallas_src>

<mosaic_0001>
module attributes {stable_mosaic.version = 11 : i64} {
  func.func @kernel(%arg0: i32, %arg1: memref<1x8x256xf32, #tpu.memory_space<vmem>>, %arg2: memref<1x8x256xf32, #tpu.memory_space<vmem>>, %arg3: memref<1x8x256xf32, #tpu.memory_space<vmem>>, %arg4: memref<1x8x256xf32, #tpu.memory_space<vmem>>, %arg5: memref<80x128xf32, #tpu.memory_space<vmem>>, %arg6: memref<1x8x256xf32, #tpu.memory_space<vmem>>) attributes {dimension_semantics = [#tpu.dimension_semantics<parallel>], iteration_bounds = array<i64: 2>, scalar_prefetch = 0 : i64, scratch_operands = 0 : i64, tpu.core_type = #tpu.core_type<tc>, window_params = [{transform_indices = @transform_0, window_bounds = array<i64: 1, 8, 256>}, {transform_indices = @transform_1, window_bounds = array<i64: 1, 8, 256>}, {transform_indices = @transform_2, window_bounds = array<i64: 1, 8, 256>}, {transform_indices = @transform_3, window_bounds = array<i64: 1, 8, 256>}, {pipeline_mode = #tpu.pipeline_mode<synchronous>, transform_indices = @transform_4, window_bounds = array<i64: 80, 128>}, {transform_indices = @transform_5, window_bounds = array<i64: 1, 8, 256>}]} {
    %c48 = arith.constant 48 : index
    %c0 = arith.constant 0 : index
    %0 = vector.load %arg5[%c48, %c0] : memref<80x128xf32, #tpu.memory_space<vmem>>, vector<8x16xf32>
    %c48_0 = arith.constant 48 : index
    %c16 = arith.constant 16 : index
    %1 = vector.load %arg5[%c48_0, %c16] : memref<80x128xf32, #tpu.memory_space<vmem>>, vector<8x1xf32>
    %c56 = arith.constant 56 : index
    %c0_1 = arith.constant 0 : index
    %2 = vector.load %arg5[%c56, %c0_1] : memref<80x128xf32, #tpu.memory_space<vmem>>, vector<4x32xf32>
    %c56_2 = arith.constant 56 : index
    %c32 = arith.constant 32 : index
    %3 = vector.load %arg5[%c56_2, %c32] : memref<80x128xf32, #tpu.memory_space<vmem>>, vector<4x1xf32>
    %c64 = arith.constant 64 : index
    %c0_3 = arith.constant 0 : index
    %4 = vector.load %arg5[%c64, %c0_3] : memref<80x128xf32, #tpu.memory_space<vmem>>, vector<16x16xf32>
    %c32_4 = arith.constant 32 : index
    %c16_5 = arith.constant 16 : index
    %5 = vector.load %arg5[%c32_4, %c16_5] : memref<80x128xf32, #tpu.memory_space<vmem>>, vector<16x8xf32>
    %c32_6 = arith.constant 32 : index
    %c24 = arith.constant 24 : index
    %6 = vector.load %arg5[%c32_6, %c24] : memref<80x128xf32, #tpu.memory_space<vmem>>, vector<16x1xf32>
    %c0_7 = arith.constant 0 : index
    %c0_8 = arith.constant 0 : index
    %c0_9 = arith.constant 0 : index
    %7 = vector.load %arg1[%c0_7, %c0_8, %c0_9] : memref<1x8x256xf32, #tpu.memory_space<vmem>>, vector<1x8x256xf32>
    %8 = vector.shape_cast %7 : vector<1x8x256xf32> to vector<8x256xf32>
    %c0_10 = arith.constant 0 : index
    %c0_11 = arith.constant 0 : index
    %c0_12 = arith.constant 0 : index
    %9 = vector.load %arg2[%c0_10, %c0_11, %c0_12] : memref<1x8x256xf32, #tpu.memory_space<vmem>>, vector<1x8x256xf32>
    %10 = vector.shape_cast %9 : vector<1x8x256xf32> to vector<8x256xf32>
    %c0_13 = arith.constant 0 : index
    %c0_14 = arith.constant 0 : index
    %c0_15 = arith.constant 0 : index
    %11 = vector.load %arg3[%c0_13, %c0_14, %c0_15] : memref<1x8x256xf32, #tpu.memory_space<vmem>>, vector<1x8x256xf32>
    %12 = vector.shape_cast %11 : vector<1x8x256xf32> to vector<8x256xf32>
    %c0_16 = arith.constant 0 : index
    %c0_17 = arith.constant 0 : index
    %c0_18 = arith.constant 0 : index
    %13 = vector.load %arg4[%c0_16, %c0_17, %c0_18] : memref<1x8x256xf32, #tpu.memory_space<vmem>>, vector<1x8x256xf32>
    %14 = vector.shape_cast %13 : vector<1x8x256xf32> to vector<8x256xf32>
    %15 = tpu.concatenate %8, %10, %12 in 0 : vector<8x256xf32>, vector<8x256xf32>, vector<8x256xf32> -> vector<24x256xf32>
    %cst = arith.constant dense<0.000000e+00> : vector<16x256xf32>
    %16 = tpu.matmul %5, %12, %cst {dimension_numbers = #tpu.dot_dimension_numbers<[1], [0], [0], [1], [0, 0, 1, 1], [], []>} : vector<16x8xf32>, vector<8x256xf32>, vector<16x256xf32> -> vector<16x256xf32>
    %17 = vector.broadcast %6 : vector<16x1xf32> to vector<16x256xf32>
    %18 = arith.addf %16, %17 : vector<16x256xf32>
    %cst_19 = arith.constant dense<0.000000e+00> : vector<16x256xf32>
    %19 = tpu.matmul %4, %18, %cst_19 {dimension_numbers = #tpu.dot_dimension_numbers<[1], [0], [0], [1], [0, 0, 1, 1], [], []>} : vector<16x16xf32>, vector<16x256xf32>, vector<16x256xf32> -> vector<16x256xf32>
    %cst_20 = arith.constant dense<0.000000e+00> : vector<8x256xf32>
    %20 = tpu.matmul %0, %19, %cst_20 {dimension_numbers = #tpu.dot_dimension_numbers<[1], [0], [0], [1], [0, 0, 1, 1], [], []>} : vector<8x16xf32>, vector<16x256xf32>, vector<8x256xf32> -> vector<8x256xf32>
    %21 = vector.broadcast %1 : vector<8x1xf32> to vector<8x256xf32>
    %22 = arith.addf %20, %21 : vector<8x256xf32>
    %23 = arith.addf %22, %14 : vector<8x256xf32>
    %24 = tpu.concatenate %15, %23 in 0 : vector<24x256xf32>, vector<8x256xf32> -> vector<32x256xf32>
    %cst_21 = arith.constant dense<0.000000e+00> : vector<4x256xf32>
    %25 = tpu.matmul %2, %24, %cst_21 {dimension_numbers = #tpu.dot_dimension_numbers<[1], [0], [0], [1], [0, 0, 1, 1], [], []>} : vector<4x32xf32>, vector<32x256xf32>, vector<4x256xf32> -> vector<4x256xf32>
    %26 = vector.broadcast %3 : vector<4x1xf32> to vector<4x256xf32>
    %27 = arith.addf %25, %26 : vector<4x256xf32>
    %28 = arith.negf %27 : vector<4x256xf32>
    %29 = math.exp %28 : vector<4x256xf32>
    %cst_22 = arith.constant 1.000000e+00 : f32
    %30 = vector.broadcast %cst_22 : f32 to vector<4x256xf32>
    %31 = arith.addf %30, %29 : vector<4x256xf32>
    %32 = arith.divf %30, %31 : vector<4x256xf32>
    %33 = vector.extract_strided_slice %32 {offsets = [0, 0], sizes = [1, 256], strides = [1, 1]} : vector<4x256xf32> to vector<1x256xf32>
    %34 = vector.broadcast %33 : vector<1x256xf32> to vector<8x256xf32>
    %35 = arith.mulf %34, %8 : vector<8x256xf32>
    %36 = vector.extract_strided_slice %32 {offsets = [1, 0], sizes = [1, 256], strides = [1, 1]} : vector<4x256xf32> to vector<1x256xf32>
    %37 = vector.broadcast %36 : vector<1x256xf32> to vector<8x256xf32>
    %38 = arith.mulf %37, %10 : vector<8x256xf32>
    %39 = arith.addf %35, %38 : vector<8x256xf32>
    %40 = vector.extract_strided_slice %32 {offsets = [2, 0], sizes = [1, 256], strides = [1, 1]} : vector<4x256xf32> to vector<1x256xf32>
    %41 = vector.broadcast %40 : vector<1x256xf32> to vector<8x256xf32>
    %42 = arith.mulf %41, %12 : vector<8x256xf32>
    %43 = arith.addf %39, %42 : vector<8x256xf32>
    %44 = vector.extract_strided_slice %32 {offsets = [3, 0], sizes = [1, 256], strides = [1, 1]} : vector<4x256xf32> to vector<1x256xf32>
    %45 = vector.broadcast %44 : vector<1x256xf32> to vector<8x256xf32>
    %46 = arith.mulf %45, %23 : vector<8x256xf32>
    %47 = arith.addf %43, %46 : vector<8x256xf32>
    %c0_23 = arith.constant 0 : index
    %c0_24 = arith.constant 0 : index
    %c0_25 = arith.constant 0 : index
    %48 = vector.load %arg6[%c0_23, %c0_24, %c0_25] : memref<1x8x256xf32, #tpu.memory_space<vmem>>, vector<1x8x256xf32>
    %49 = vector.shape_cast %48 : vector<1x8x256xf32> to vector<8x256xf32>
    %50 = vector.shape_cast %47 : vector<8x256xf32> to vector<1x8x256xf32>
    tpu.vector_store %arg6[%c0_23, %c0_24, %c0_25], %50 {strides = array<i32>} : memref<1x8x256xf32, #tpu.memory_space<vmem>>, vector<1x8x256xf32>,
    return
  }
  func.func @transform_0(%arg0: i32) -> (i32, i32, i32) {
    %c0_i32 = arith.constant 0 : i32
    %c0_i32_0 = arith.constant 0 : i32
    %c0_i32_1 = arith.constant 0 : i32
    return %arg0, %c0_i32, %c0_i32_0 : i32, i32, i32
  }
  func.func @transform_1(%arg0: i32) -> (i32, i32, i32) {
    %c0_i32 = arith.constant 0 : i32
    %c0_i32_0 = arith.constant 0 : i32
    %c0_i32_1 = arith.constant 0 : i32
    return %arg0, %c0_i32, %c0_i32_0 : i32, i32, i32
  }
  func.func @transform_2(%arg0: i32) -> (i32, i32, i32) {
    %c0_i32 = arith.constant 0 : i32
    %c0_i32_0 = arith.constant 0 : i32
    %c0_i32_1 = arith.constant 0 : i32
    return %arg0, %c0_i32, %c0_i32_0 : i32, i32, i32
  }
  func.func @transform_3(%arg0: i32) -> (i32, i32, i32) {
    %c0_i32 = arith.constant 0 : i32
    %c0_i32_0 = arith.constant 0 : i32
    %c0_i32_1 = arith.constant 0 : i32
    return %arg0, %c0_i32, %c0_i32_0 : i32, i32, i32
  }
  func.func @transform_4(%arg0: i32) -> (i32, i32) {
    %c0_i32 = arith.constant 0 : i32
    %c0_i32_0 = arith.constant 0 : i32
    %c0_i32_1 = arith.constant 0 : i32
    return %c0_i32, %c0_i32_0 : i32, i32
  }
  func.func @transform_5(%arg0: i32) -> (i32, i32, i32) {
    %c0_i32 = arith.constant 0 : i32
    %c0_i32_0 = arith.constant 0 : i32
    %c0_i32_1 = arith.constant 0 : i32
    return %arg0, %c0_i32, %c0_i32_0 : i32, i32, i32
  }
}

</mosaic_0001>

<bundles_post_ra>
// kernel: cross_sigmoid_attention.1
= control target key start
LH: loop header
LB: loop body
LE: loop exit
PB: predicated region body
PF: predicated region fallthrough
CT: control target
= control target key end

     0   :  { %s887_s18 = smov 0   ;;  %s951_s0 = inlined_call_operand.vmem [shape: f32[2,8,256], index: 0, kind: input, shape index: {}]   ;;  %s952_s1 = inlined_call_operand.vmem [shape: f32[2,8,256], index: 1, kind: input, shape index: {}]   ;;  %s953_s2 = inlined_call_operand.vmem [shape: f32[2,8,256], index: 2, kind: input, shape index: {}]   ;;  %s954_s3 = inlined_call_operand.vmem [shape: f32[2,8,256], index: 3, kind: input, shape index: {}]   ;;  %s955_s4 = inlined_call_operand.vmem [shape: f32[80,128], index: 4, kind: input, shape index: {}]   ;;  %s956_s5 = inlined_call_operand.vmem [shape: f32[2,8,256], index: 5, kind: output, shape index: {}]  }
   0x1 LB: > { %s789_s19 = sadd.s32 4294967295, %s850_s18   ;;  %p793_p0 = scmp.ge.s32.totalorder %s850_s18, 1  ;;  %s850_s18 = sphi %s887_s18, %s15_s18  }
   0x2   : > { %p217_p1 = scmp.lt.s32.totalorder %s850_s18, 3 }
   0x4   : > { %p218_p2 = pnand %p793_p0, %p217_p1 }
   0x5   : > { %p260_p3 = scmp.lt.s32.totalorder (!%p218_p2), %s789_s19, 1  ;;  %s852_s22 = smov (!%p218_p2), 112  }
   0x6   : > { %221 = sbr.rel (%p218_p2) target bundleno = 982 (0x3d6), region = 40 }
   0xb   : > { %v289_v0 = vld [vmem:[%s955_s4 + $0x20] sm:$0xff]  ;;  %v853_v1 = vmov 0.0   ;;  %v290_v2 = vld [vmem:[%s955_s4 + $0x28] sm:$0xff]  ;;  %s958_s19 = smov (!%p260_p3, %s789_s19), 1  ;;  %v854_v3 = vmov 24   ;;  %vm313_vm0 = vcmask 64512   ;;  %v650_v52 = vlaneseq }
   0xc   : > { %309 = vrot.lane.b32.xlu0 %v289_v0, %s852_s22  ;;  %382 = vmatprep.mubr.f32.mxu0 %v853_v1  ;;  %s901_s25 = sshll.u32 %s958_s19, 4  ;;  %v287_v18 = vld [vmem:[%s955_s4 + $0x40] sm:$0xff]  ;;  %vm395_vm1 = vcmask 130048   ;;  %v288_v19 = vld [vmem:[%s955_s4 + $0x48] sm:$0xff]  ;;  %v285_v20 = vld [vmem:[%s955_s4 + $0x30] sm:$0xff]  ;;  %v855_v21 = vmov 16  }
   0xd   : > { %832 = vset.pattern.permute.xlu1 %v854_v3  ;;  %466 = vmatprep.mubr.f32.mxu1 %v853_v1  ;;  %s274_s28 = scalar_lea.vmem %s953_s2, %s901_s25  ;;  %v286_v26 = vld [vmem:[%s955_s4 + $0x38] sm:$0xf]  ;;  %v856_v27 = vmov 32   ;;  %s279_s14 = scalar_lea.vmem %s954_s3, %s901_s25  ;;  %vm564_vm2 = vcmask 261120   ;;  %v651_v53 = vshrl.u32 %v650_v52, 7 }
   0xe   : > { %306 = vperm.xlu1 %832, %v290_v2   ;;  %v907_v4 = vld [vmem:[%s274_s28 + $0x8] sm:$0xff]  ;;  %v909_v5 = vld [vmem:[%s274_s28] sm:$0xff]  ;;  %833 = vset.pattern.permute.xlu0 %v855_v21  ;;  %s269_s17 = scalar_lea.vmem %s952_s1, %s901_s25  ;;  %s264_s21 = scalar_lea.vmem %s951_s0, %s901_s25 }
   0xf   : > { %348 = vmatprep.subr.mxu0 %v907_v4  ;;  %v298_v31 = vld [vmem:[%s279_s14 + $0x8] sm:$0xff]  ;;  %v297_v33 = vld [vmem:[%s279_s14] sm:$0xff]  ;;  %v652_v54 = vsub.s32 0, %v651_v53  ;;  %v662_v55 = vsub.s32 1, %v651_v53  ;;  %v674_v56 = vsub.s32 2, %v651_v53  ;;  %v686_v57 = vsub.s32 3, %v651_v53  ;;  %s284_s24 = scalar_lea.vmem %s956_s5, %s901_s25 }
  0x10   : > { %311 = vrot.lane.b32.xlu0 %v290_v2, %s852_s22  ;;  %349 = vmatpush1.msra.mxu0 %v909_v5  ;;  %v294_v37 = vld [vmem:[%s269_s17 + $0x8] sm:$0xff]  ;;  %v293_v38 = vld [vmem:[%s269_s17] sm:$0xff] }
  0x11   : > { %v292_v39 = vld [vmem:[%s264_s21 + $0x8] sm:$0xff]  ;;  %v291_v40 = vld [vmem:[%s264_s21] sm:$0xff] }
  0x12   : > { %301 = vperm.xlu1 %832, %v289_v0  }
  0x14   : > { %481 = vperm.xlu0 %833, %v285_v20  }
  0x16   : > { %834 = vset.pattern.permute.xlu1 %v856_v27 }
  0x17   : > { %561 = vperm.xlu1 %834, %v286_v26  }
  0x18   : > { %835 = vset.pattern.permute.xlu0 %v856_v27 }
  0x7e   : > { %v310_v6 = vpop.permute.xlu0 %309 }
  0x7f   : > { %804 = vmatmul.mubr.msk.f32.vlgmr.msra.gmra.mxu0 %vm313_vm0, %v310_v6 }
  0x80   : > { %388 = vmatprep.mubr.f32.mxu0 %v853_v1 }
  0x82   : > { %v312_v7 = vpop.permute.xlu0 %311 }
  0x83   : > { %805 = vmatmul.mubr.msk.f32.gmra.mxu0 %vm313_vm0, %v312_v7 }
  0x84   : > { %550 = vmatprep.mubr.f32.mxu0 %v853_v1 }
  0x89   : > { %v307_v9 = vpop.permute.xlu1 %306 }
  0x8d   : > { %v302_v13 = vpop.permute.xlu1 %301 }
  0x8f   : > { %v482_v28 = vpop.permute.xlu0 %481 }
  0x92   : > { %v562_v41 = vpop.permute.xlu1 %561 }
 0x13f   : > { %v384_v8 = vpop.f32.mrf.mxu0 }
 0x140   : > { %v385_v17 = vadd.f32 %v384_v8, %v302_v13 }
 0x141   : > { %v386_v10 = vpop.f32.mrf.mxu0 }
 0x142   : > { %v387_v16 = vadd.f32 %v386_v10, %v302_v13 }
 0x143   : > { %v390_v11 = vpop.f32.mrf.mxu0 }
 0x144   : > { %v391_v15 = vadd.f32 %v390_v11, %v307_v9 }
 0x145   : > { %v392_v12 = vpop.f32.mrf.mxu0 }
 0x146   : > { %v393_v14 = vadd.f32 %v392_v12, %v307_v9 }
 0x148   : > { %430 = vmatprep.subr.mxu1 %v393_v14 }
 0x149   : > { %431 = vmatpush1.msra.mxu1 %v391_v15 }
 0x14a   : > { %432 = vmatprep.subr.mxu1 %v387_v16 }
 0x14b   : > { %433 = vmatpush1.msra.mxu1 %v385_v17 }
 0x14c   : > { %806 = vmatmul.mubr.msk.f32.vlgmr.msra.gmra.mxu1 %vm395_vm1, %v287_v18 }
 0x14d   : > { %472 = vmatprep.mubr.f32.mxu1 %v853_v1 }
 0x150   : > { %807 = vmatmul.mubr.msk.f32.gmra.mxu1 %vm395_vm1, %v288_v19 }
 0x151   : > { %631 = vmatprep.mubr.f32.mxu1 %v853_v1 }
 0x20c   : > { %v468_v22 = vpop.f32.mrf.mxu1 }
 0x20e   : > { %v470_v23 = vpop.f32.mrf.mxu1 }
 0x210   : > { %v474_v24 = vpop.f32.mrf.mxu1 }
 0x212   : > { %v476_v25 = vpop.f32.mrf.mxu1 }
 0x213   : > { %514 = vmatprep.subr.mxu0 %v476_v25 }
 0x214   : > { %515 = vmatpush1.msra.mxu0 %v474_v24 }
 0x215   : > { %516 = vmatprep.subr.mxu0 %v470_v23 }
 0x216   : > { %517 = vmatpush1.msra.mxu0 %v468_v22 }
 0x217   : > { %808 = vmatmul.mubr.msk.f32.vlgmr.msra.gmra.mxu0 %vm395_vm1, %v285_v20 }
 0x2d7   : > { %v552_v29 = vpop.f32.mrf.mxu0 }
 0x2d8   : > { %v553_v30 = vadd.f32 %v552_v29, %v482_v28 }
 0x2d9   : > { %v554_v32 = vpop.f32.mrf.mxu0 }
 0x2da   : > { %v555_v34 = vadd.f32 %v554_v32, %v482_v28  ;;  %v557_v36 = vadd.f32 %v553_v30, %v297_v33 }
 0x2dc   : > { %v558_v35 = vadd.f32 %v555_v34, %v298_v31 }
 0x2de   : > { %591 = vmatprep.subr.mxu1 %v558_v35 }
 0x2df   : > { %592 = vmatpush1.msra.mxu1 %v557_v36 }
 0x2e0   : > { %593 = vmatprep.subr.mxu1 %v907_v4 }
 0x2e1   : > { %594 = vmatpush1.msra.mxu1 %v909_v5 }
 0x2e2   : > { %595 = vmatprep.subr.mxu1 %v294_v37 }
 0x2e3   : > { %596 = vmatpush1.msra.mxu1 %v293_v38 }
 0x2e4   : > { %597 = vmatprep.subr.mxu1 %v292_v39 }
 0x2e5   : > { %598 = vmatpush1.msra.mxu1 %v291_v40 }
 0x2e6   : > { %809 = vmatmul.mubr.msk.f32.vlgmr.msra.gmra.mxu1 %vm564_vm2, %v286_v26 }
 0x3a6   : > { %v633_v42 = vpop.f32.mrf.mxu1 }
 0x3a7   : > { %v634_v43 = vadd.f32 %v633_v42, %v562_v41 }
 0x3a8   : > { %v635_v44 = vpop.f32.mrf.mxu1 }
 0x3a9   : > { %v810_v45 = vmul.f32 -1.442695, %v634_v43  ;;  %v636_v46 = vadd.f32 %v635_v44, %v562_v41 }
 0x3ab   : > { %836 = vpow2.f32 %v810_v45  ;;  %v811_v47 = vmul.f32 -1.442695, %v636_v46 }
 0x3ad   : > { %838 = vpow2.f32 %v811_v47 }
 0x3b8   : > { %v837_v48 = vpop.eup %836 }
 0x3b9   : > { %v644_v49 = vadd.f32 1.0, %v837_v48 }
 0x3ba   : > { %v839_v50 = vpop.eup %838 }
 0x3bb   : > { %840 = vrcp.f32 %v644_v49  ;;  %v645_v51 = vadd.f32 1.0, %v839_v50 }
 0x3bd   : > { %842 = vrcp.f32 %v645_v51 }
 0x3c8   : > { %v841_v58 = vpop.eup %840 }
 0x3c9   : > { %v653_v59 = vrot.slane %v841_v58, %v652_v54  ;;  %v663_v60 = vrot.slane %v841_v58, %v662_v55  ;;  %v675_v61 = vrot.slane %v841_v58, %v674_v56  ;;  %v687_v1 = vrot.slane %v841_v58, %v686_v57 }
 0x3ca   : > { %v843_v62 = vpop.eup %842 }
 0x3cb   : > { %v658_v63 = vmul.f32 %v653_v59, %v291_v40  ;;  %v668_v0 = vmul.f32 %v663_v60, %v293_v38  ;;  %v657_v2 = vrot.slane %v843_v62, %v652_v54  ;;  %v667_v3 = vrot.slane %v843_v62, %v662_v55 }
 0x3cc   : > { %v679_v6 = vrot.slane %v843_v62, %v674_v56  ;;  %v680_v8 = vmul.f32 %v675_v61, %v909_v5  ;;  %v691_v11 = vrot.slane %v843_v62, %v686_v57  ;;  %v692_v13 = vmul.f32 %v687_v1, %v557_v36 }
 0x3cd   : > { %v670_v7 = vadd.f32 %v668_v0, %v658_v63  ;;  %v659_v9 = vmul.f32 %v657_v2, %v292_v39  ;;  %v669_v10 = vmul.f32 %v667_v3, %v294_v37 }
 0x3ce   : > { %v681_v15 = vmul.f32 %v679_v6, %v907_v4  ;;  %v693_v18 = vmul.f32 %v691_v11, %v558_v35 }
 0x3cf   : > { %v682_v12 = vadd.f32 %v680_v8, %v670_v7  ;;  %v671_v14 = vadd.f32 %v669_v10, %v659_v9 }
 0x3d1   : > { %v694_v16 = vadd.f32 %v692_v13, %v682_v12  ;;  %v683_v17 = vadd.f32 %v681_v15, %v671_v14 }
 0x3d3   : > { %696 = vst [vmem:[%s284_s24] sm:$0xff] %v694_v16  ;;  %v695_v19 = vadd.f32 %v693_v18, %v683_v17 }
 0x3d5   : > { %697 = vst [vmem:[%s284_s24 + $0x8] sm:$0xff] %v695_v19 }
 0x3d6 PF: > { %s15_s18 = sadd.s32 1, %s850_s18  }
 0x3d7   : > { %p12_p4 = scmp.ge.s32.totalorder %s15_s18, 4  }
 0x3d9   :  { %14 = sbr.rel (!%p12_p4) target bundleno = 1 (0x1), region = 79 }

</bundles_post_ra>
